<compile_context>
chip_gen: v6e
topology: v6e:2x2x1
jax: 0.10.0
libtpu: 0.0.40
codegen_flags: <defaults>
</compile_context>

<pallas_src>
import jax
import jax.numpy as jnp
from jax.experimental import pallas as pl
from jax.experimental.pallas import tpu as pltpu


def find_multiple(n: int, k: int) -> int:
    if n % k == 0:
        return n
    return n + k - n % k


def _round_up(n: int, k: int) -> int:
    return (n + k - 1) // k * k


# ---------------------------------------------------------------------------
# Kernel
# ---------------------------------------------------------------------------
def _ffn_kernel(x_ref, w1_ref, w2_ref, w3_ref, o_ref):
    # x_ref:  (tm, D)     bf16, resident across the k (hidden) axis
    # w1_ref: (1, D, th)  bf16, contiguous tile k of W1^T
    # w2_ref: (1, D, th)  bf16, contiguous tile k of W2^T
    # w3_ref: (1, th, D)  bf16, contiguous tile k of W3^T
    # o_ref:  (tm, D)     f32, k-resident output block used as accumulator
    k = pl.program_id(1)

    x = x_ref[...]
    # Two back-to-back MXU matmuls; gate immediately (VPU/EUP overlaps MXU).
    h1 = jnp.dot(x, w1_ref[0], preferred_element_type=jnp.float32)
    g = h1 * jax.nn.sigmoid(h1)                      # silu, f32 (EUP sigmoid)
    h2 = jnp.dot(x, w2_ref[0], preferred_element_type=jnp.float32)
    gated = (g * h2).astype(w3_ref.dtype)            # bf16 for the MXU

    partial = jnp.dot(gated, w3_ref[0], preferred_element_type=jnp.float32)

    @pl.when(k == 0)
    def _():
        o_ref[...] = partial

    @pl.when(k != 0)
    def _():
        o_ref[...] += partial


# ---------------------------------------------------------------------------
# One-time weight preparation (run OUTSIDE the hot path / jit).
# ---------------------------------------------------------------------------
def prepare_ffn_weights(w1_t, w2_t, w3_t, *, th=512, compute_dtype=jnp.bfloat16):
    """w1_t/w2_t: (dim, hidden).  w3_t: (hidden, dim).

    Returns (w1p, w2p, w3p) with shapes (kt, D, th), (kt, D, th), (kt, th, D)
    in `compute_dtype`, zero-padded along hidden so th | hidden.  Each k tile
    is contiguous in HBM, so weight DMAs are single contiguous bursts.
    """
    D, H = w1_t.shape
    th = min(th, H)                    # H is a multiple of 256 in AuraFlow
    Hp = _round_up(H, th)
    pad_h = Hp - H
    if pad_h:
        # Zero hidden columns / zero W3 rows contribute exactly 0 to the output.
        w1_t = jnp.pad(w1_t, ((0, 0), (0, pad_h)))
        w2_t = jnp.pad(w2_t, ((0, 0), (0, pad_h)))
        w3_t = jnp.pad(w3_t, ((0, pad_h), (0, 0)))
    kt = Hp // th
    w1p = w1_t.astype(compute_dtype).reshape(D, kt, th).transpose(1, 0, 2)
    w2p = w2_t.astype(compute_dtype).reshape(D, kt, th).transpose(1, 0, 2)
    w3p = w3_t.astype(compute_dtype).reshape(kt, th, D)
    return w1p, w2p, w3p


# ---------------------------------------------------------------------------
# Per-generation budgeting helpers
# ---------------------------------------------------------------------------
def _device_budget():
    """Returns (vmem_limit_bytes, tm_default, num_tensorcores)."""
    try:
        kind = jax.devices()[0].device_kind.lower()
    except Exception:
        kind = ""
    is_v7 = "v7" in kind
    if is_v7:
        # 64 MiB physical per TC: leave headroom for compiler scratch/spills.
        return 52 * 1024 * 1024, 512, 2
    # v5e / v6e: 128 MiB physical.
    return 100 * 1024 * 1024, 1024, 1


def _vmem_bytes_estimate(tm, th, D):
    bf2, f4 = 2, 4
    w_tiles = 3 * D * th * bf2 * 2          # w1, w2, w3 tiles, double-buffered
    x_tile = tm * D * bf2 * 2               # x tile, double-buffered
    out_tile = tm * D * f4 * 2              # f32 output block, double-buffered
    interm = tm * th * f4 * 2 + tm * th * bf2   # h1/h2 f32 + gated bf16 (rough)
    return w_tiles + x_tile + out_tile + interm


# ---------------------------------------------------------------------------
# Wrapper
# ---------------------------------------------------------------------------
def auraflow_ffn(x, w1p, w2p, w3p, *, tm=None):
    """x: (..., dim).  w1p/w2p/w3p from prepare_ffn_weights."""
    orig_shape = x.shape
    D = orig_shape[-1]
    kt, Dw, th = w1p.shape
    assert Dw == D and w3p.shape == (kt, th, D)
    Hp = kt * th

    xm = x.reshape(-1, D)
    M = xm.shape[0]

    vmem_limit, tm_default, cores = _device_budget()
    if tm is None:
        tm = tm_default

    # ---- M tile: multiple of 8; never shrink to "divide M" -- pad M instead.
    tm = min(tm, _round_up(M, 8))
    # On multi-TensorCore parts, make sure the parallel M axis has >= `cores`
    # blocks when there is enough work to split.
    if cores > 1 and M >= 512 and pl.cdiv(M, tm) < cores:
        tm = max(256, _round_up(pl.cdiv(M, cores), 256))
    # Respect the per-generation VMEM budget (shrink tm only if needed).
    while tm > 8 and _vmem_bytes_estimate(tm, th, D) > int(0.85 * vmem_limit):
        tm = max(8, (tm // 2) // 8 * 8)

    pad_m = (-M) % tm
    if pad_m:
        xm = jnp.pad(xm, ((0, pad_m), (0, 0)))
    Mp = xm.shape[0]
    n_m_blocks = Mp // tm

    compute_dtype = w1p.dtype
    xm_c = xm.astype(compute_dtype)

    weight_bytes = int(w1p.size + w2p.size + w3p.size) * jnp.dtype(compute_dtype).itemsize
    cost = pl.CostEstimate(
        flops=6 * Mp * D * Hp,
        transcendentals=Mp * Hp,
        bytes_accessed=(xm_c.size * jnp.dtype(compute_dtype).itemsize
                        + n_m_blocks * weight_bytes
                        + Mp * D * 4),
    )

    out = pl.pallas_call(
        _ffn_kernel,
        out_shape=jax.ShapeDtypeStruct((Mp, D), jnp.float32),
        grid_spec=pltpu.PrefetchScalarGridSpec(
            num_scalar_prefetch=0,
            grid=(n_m_blocks, kt),                     # reduction axis last
            in_specs=[
                pl.BlockSpec((tm, D), lambda i, k: (i, 0)),       # x (resident over k)
                pl.BlockSpec((1, D, th), lambda i, k: (k, 0, 0)),  # W1 tile k (contiguous)
                pl.BlockSpec((1, D, th), lambda i, k: (k, 0, 0)),  # W2 tile k (contiguous)
                pl.BlockSpec((1, th, D), lambda i, k: (k, 0, 0)),  # W3 tile k (contiguous)
            ],
            out_specs=pl.BlockSpec((tm, D), lambda i, k: (i, 0)),
        ),
        compiler_params=pltpu.CompilerParams(
            dimension_semantics=("parallel", "arbitrary"),
            vmem_limit_bytes=vmem_limit,
        ),
        cost_estimate=cost,
    )(xm_c, w1p, w2p, w3p)

    if pad_m:
        out = out[:M]
    out = out.astype(x.dtype)
    return out.reshape(orig_shape)


# ---------------------------------------------------------------------------
# Reference (matches the kernel's bf16-operand / f32-accumulate numerics)
# ---------------------------------------------------------------------------
def reference_ffn_bf16(x, w1_t, w2_t, w3_t):
    hp = jax.lax.Precision.HIGHEST
    xb = x.astype(jnp.bfloat16).astype(jnp.float32)
    w1 = w1_t.astype(jnp.bfloat16).astype(jnp.float32)
    w2 = w2_t.astype(jnp.bfloat16).astype(jnp.float32)
    w3 = w3_t.astype(jnp.bfloat16).astype(jnp.float32)
    h = jax.nn.silu(jnp.dot(xb, w1, precision=hp)) * jnp.dot(xb, w2, precision=hp)
    h = h.astype(jnp.bfloat16).astype(jnp.float32)
    return jnp.dot(h, w3, precision=hp).astype(x.dtype)


if __name__ == "__main__":
    # Small shapes consistent with the module: dim=128 -> hidden_dim=512,
    # final_hidden_dim = find_multiple(int(2*512/3), 256) = 512.
    # TODO(synk): set_chunk_feed_forward / _chunk_forward is a host-side chunk
    # loop with identical math; the unchunked path implemented here covers it.
    batch, seq, dim = 2, 8, 128
    hidden_dim = 4 * dim
    final_hidden_dim = find_multiple(int(2 * hidden_dim / 3), 256)

    key = jax.random.PRNGKey(0)
    kx, k1, k2, k3 = jax.random.split(key, 4)

    x = jax.random.normal(kx, (batch, seq, dim), dtype=jnp.float32)
    # nn.Linear(dim, final_hidden_dim).weight has shape (final_hidden_dim, dim);
    # we store the transpose (dim, final_hidden_dim) for row-major matmul.
    w1_t = (jax.random.normal(k1, (dim, final_hidden_dim), dtype=jnp.float32)
            * (dim ** -0.5))
    w2_t = (jax.random.normal(k2, (dim, final_hidden_dim), dtype=jnp.float32)
            * (dim ** -0.5))
    w3_t = (jax.random.normal(k3, (final_hidden_dim, dim), dtype=jnp.float32)
            * (final_hidden_dim ** -0.5))

    # One-time weight preparation (bf16 cast + contiguous leading-k layout).
    w1p, w2p, w3p = prepare_ffn_weights(w1_t, w2_t, w3_t, th=512)

    y = auraflow_ffn(x, w1p, w2p, w3p)
    jax.block_until_ready(y)

    y_ref = reference_ffn_bf16(x, w1_t, w2_t, w3_t)
    assert y.shape == x.shape, (y.shape, x.shape)
    max_err = float(jnp.max(jnp.abs(y - y_ref)))
    assert jnp.allclose(y, y_ref, atol=2e-2, rtol=2e-2), max_err

    print("KERNEL_OK")
</pallas_src>

<mosaic_0001>
module attributes {stable_mosaic.version = 11 : i64} {
  func.func @_ffn_kernel(%arg0: i32, %arg1: i32, %arg2: memref<16x128xbf16, #tpu.memory_space<vmem>>, %arg3: memref<1x128x512xbf16, #tpu.memory_space<vmem>>, %arg4: memref<1x128x512xbf16, #tpu.memory_space<vmem>>, %arg5: memref<1x512x128xbf16, #tpu.memory_space<vmem>>, %arg6: memref<16x128xf32, #tpu.memory_space<vmem>>) attributes {dimension_semantics = [#tpu.dimension_semantics<parallel>, #tpu.dimension_semantics<arbitrary>], iteration_bounds = array<i64: 1, 1>, scalar_prefetch = 0 : i64, scratch_operands = 0 : i64, tpu.core_type = #tpu.core_type<tc>, window_params = [{transform_indices = @transform_0, window_bounds = array<i64: 16, 128>}, {transform_indices = @transform_1, window_bounds = array<i64: 1, 128, 512>}, {transform_indices = @transform_2, window_bounds = array<i64: 1, 128, 512>}, {transform_indices = @transform_3, window_bounds = array<i64: 1, 512, 128>}, {transform_indices = @transform_4, window_bounds = array<i64: 16, 128>}]} {
    %c0 = arith.constant 0 : index
    %c0_0 = arith.constant 0 : index
    %0 = vector.load %arg2[%c0, %c0_0] : memref<16x128xbf16, #tpu.memory_space<vmem>>, vector<16x128xbf16>
    %c0_1 = arith.constant 0 : index
    %c0_2 = arith.constant 0 : index
    %c0_3 = arith.constant 0 : index
    %1 = vector.load %arg3[%c0_1, %c0_2, %c0_3] : memref<1x128x512xbf16, #tpu.memory_space<vmem>>, vector<1x128x512xbf16>
    %2 = vector.shape_cast %1 : vector<1x128x512xbf16> to vector<128x512xbf16>
    %cst = arith.constant dense<0.000000e+00> : vector<16x512xf32>
    %3 = tpu.matmul %0, %2, %cst {dimension_numbers = #tpu.dot_dimension_numbers<[1], [0], [0], [1], [0, 0, 1, 1], [], []>} : vector<16x128xbf16>, vector<128x512xbf16>, vector<16x512xf32> -> vector<16x512xf32>
    %4 = arith.negf %3 : vector<16x512xf32>
    %5 = math.exp %4 : vector<16x512xf32>
    %cst_4 = arith.constant 1.000000e+00 : f32
    %6 = vector.broadcast %cst_4 : f32 to vector<16x512xf32>
    %7 = arith.addf %6, %5 : vector<16x512xf32>
    %8 = arith.divf %6, %7 : vector<16x512xf32>
    %9 = arith.mulf %3, %8 : vector<16x512xf32>
    %c0_5 = arith.constant 0 : index
    %c0_6 = arith.constant 0 : index
    %c0_7 = arith.constant 0 : index
    %10 = vector.load %arg4[%c0_5, %c0_6, %c0_7] : memref<1x128x512xbf16, #tpu.memory_space<vmem>>, vector<1x128x512xbf16>
    %11 = vector.shape_cast %10 : vector<1x128x512xbf16> to vector<128x512xbf16>
    %cst_8 = arith.constant dense<0.000000e+00> : vector<16x512xf32>
    %12 = tpu.matmul %0, %11, %cst_8 {dimension_numbers = #tpu.dot_dimension_numbers<[1], [0], [0], [1], [0, 0, 1, 1], [], []>} : vector<16x128xbf16>, vector<128x512xbf16>, vector<16x512xf32> -> vector<16x512xf32>
    %13 = arith.mulf %9, %12 : vector<16x512xf32>
    %14 = arith.truncf %13 : vector<16x512xf32> to vector<16x512xbf16>
    %c0_9 = arith.constant 0 : index
    %c0_10 = arith.constant 0 : index
    %c0_11 = arith.constant 0 : index
    %15 = vector.load %arg5[%c0_9, %c0_10, %c0_11] : memref<1x512x128xbf16, #tpu.memory_space<vmem>>, vector<1x512x128xbf16>
    %16 = vector.shape_cast %15 : vector<1x512x128xbf16> to vector<512x128xbf16>
    %cst_12 = arith.constant dense<0.000000e+00> : vector<16x128xf32>
    %17 = tpu.matmul %14, %16, %cst_12 {dimension_numbers = #tpu.dot_dimension_numbers<[1], [0], [0], [1], [0, 0, 1, 1], [], []>} : vector<16x512xbf16>, vector<512x128xbf16>, vector<16x128xf32> -> vector<16x128xf32>
    %c0_i32 = arith.constant 0 : i32
    %18 = arith.cmpi eq, %arg1, %c0_i32 : i32
    %19 = arith.extui %18 : i1 to i32
    %c0_i32_13 = arith.constant 0 : i32
    %20 = arith.cmpi ne, %19, %c0_i32_13 : i32
    scf.if %20 {
      %c0_16 = arith.constant 0 : index
      %c0_17 = arith.constant 0 : index
      %24 = vector.load %arg6[%c0_16, %c0_17] : memref<16x128xf32, #tpu.memory_space<vmem>>, vector<16x128xf32>
      tpu.vector_store %arg6[%c0_16, %c0_17], %17 {strides = array<i32>} : memref<16x128xf32, #tpu.memory_space<vmem>>, vector<16x128xf32>,
    } else {
    }
    %c0_i32_14 = arith.constant 0 : i32
    %21 = arith.cmpi ne, %arg1, %c0_i32_14 : i32
    %22 = arith.extui %21 : i1 to i32
    %c0_i32_15 = arith.constant 0 : i32
    %23 = arith.cmpi ne, %22, %c0_i32_15 : i32
    scf.if %23 {
      %c0_16 = arith.constant 0 : index
      %c0_17 = arith.constant 0 : index
      %24 = vector.load %arg6[%c0_16, %c0_17] : memref<16x128xf32, #tpu.memory_space<vmem>>, vector<16x128xf32>
      %25 = arith.addf %24, %17 : vector<16x128xf32>
      %c0_18 = arith.constant 0 : index
      %c0_19 = arith.constant 0 : index
      %26 = vector.load %arg6[%c0_18, %c0_19] : memref<16x128xf32, #tpu.memory_space<vmem>>, vector<16x128xf32>
      tpu.vector_store %arg6[%c0_18, %c0_19], %25 {strides = array<i32>} : memref<16x128xf32, #tpu.memory_space<vmem>>, vector<16x128xf32>,
    } else {
    }
    return
  }
  func.func @transform_0(%arg0: i32, %arg1: i32) -> (i32, i32) {
    %c0_i32 = arith.constant 0 : i32
    %c0_i32_0 = arith.constant 0 : i32
    return %arg0, %c0_i32 : i32, i32
  }
  func.func @transform_1(%arg0: i32, %arg1: i32) -> (i32, i32, i32) {
    %c0_i32 = arith.constant 0 : i32
    %c0_i32_0 = arith.constant 0 : i32
    %c0_i32_1 = arith.constant 0 : i32
    return %arg1, %c0_i32, %c0_i32_0 : i32, i32, i32
  }
  func.func @transform_2(%arg0: i32, %arg1: i32) -> (i32, i32, i32) {
    %c0_i32 = arith.constant 0 : i32
    %c0_i32_0 = arith.constant 0 : i32
    %c0_i32_1 = arith.constant 0 : i32
    return %arg1, %c0_i32, %c0_i32_0 : i32, i32, i32
  }
  func.func @transform_3(%arg0: i32, %arg1: i32) -> (i32, i32, i32) {
    %c0_i32 = arith.constant 0 : i32
    %c0_i32_0 = arith.constant 0 : i32
    %c0_i32_1 = arith.constant 0 : i32
    return %arg1, %c0_i32, %c0_i32_0 : i32, i32, i32
  }
  func.func @transform_4(%arg0: i32, %arg1: i32) -> (i32, i32) {
    %c0_i32 = arith.constant 0 : i32
    %c0_i32_0 = arith.constant 0 : i32
    return %arg0, %c0_i32 : i32, i32
  }
}

</mosaic_0001>

<bundles_post_ra>
// kernel: tpu_custom_call.1
= control target key start
LH: loop header
LB: loop body
LE: loop exit
PB: predicated region body
PF: predicated region fallthrough
CT: control target
= control target key end

     0   :  { %9 = vsyncpa [#allocation3], 0  ;;  %s1585_s0 = inlined_call_operand.hbm [shape: bf16[16,128], index: 0, kind: input, shape index: {}]   ;;  %s1586_s1 = inlined_call_operand.hbm [shape: bf16[1,128,512], index: 1, kind: input, shape index: {}]   ;;  %s1587_s2 = inlined_call_operand.hbm [shape: bf16[1,128,512], index: 2, kind: input, shape index: {}]   ;;  %s1588_s3 = inlined_call_operand.hbm [shape: bf16[1,512,128], index: 3, kind: input, shape index: {}]   ;;  %s1589_s4 = inlined_call_operand.hbm [shape: f32[16,128], index: 4, kind: output, shape index: {}]  }
   0x1   :  { %10 = vsyncpa [#allocation6], 0 }
   0x2   :  { %11 = vsyncpa [#allocation9], 0 }
   0x3   :  { %12 = vsyncpa [#allocation4], 0  ;;  %s1509_s15 = smov [#allocation5]  }
   0x4   :  { %s30_s16 = sshll.u32 %s1509_s15, 4  ;;  %s31_s16 = int_to_ptr.vmem [resolvable:$true] %s30_s16 }
   0x5   :  { %s1409_s17 = scalar_lea.vmem %s31_s16, 4096  ;;  %p1414_p1 = scmp.lt.s32.totalorder %s31_s16, %s31_s16 }
   0x6   :  { %p1410_p0 = scmp.ne.s32.totalorder %s31_s16, %s1409_s17  ;;  %p1415_p2 = scmp.lt.s32.totalorder %s1409_s17, %s1409_s17 }
   0x8   :  { %p1416_p3 = por %p1415_p2, %p1414_p1 }
   0xa   :  { %p1417_p4 = pnand %p1416_p3, %p1410_p0 }
   0xc   :  { %1420 = shalt.err (!%p1417_p4)
}
   0xd   :  { %s1510_s18 = smov 256   ;;  %s1511_s19 = smov 16  }
   0xe   :  { %36 = dma.hbm_to_vmem [thread:$0]  %s1586_s1, 4096, %s31_s16, [#allocation6], %s1510_s18, %s1510_s18, %s1511_s19  }
   0xf   :  { %s1512_s22 = smov [#allocation2]  }
  0x10   :  { %s18_s23 = sshll.u32 %s1512_s22, 4  ;;  %s19_s23 = int_to_ptr.vmem [resolvable:$true] %s18_s23 }
  0x11   :  { %s1429_s24 = scalar_lea.vmem %s19_s23, 128  ;;  %p1434_p6 = scmp.lt.s32.totalorder %s19_s23, %s19_s23 }
  0x12   :  { %p1430_p5 = scmp.ne.s32.totalorder %s19_s23, %s1429_s24  ;;  %p1435_p7 = scmp.lt.s32.totalorder %s1429_s24, %s1429_s24 }
  0x14   :  { %p1436_p8 = por %p1435_p7, %p1434_p6 }
  0x16   :  { %p1437_p9 = pnand %p1436_p8, %p1430_p5 }
  0x18   :  { %1440 = shalt.err (!%p1437_p9)
}
  0x19   :  { %s1513_s25 = smov 64   ;;  %s1514_s26 = smov 4  }
  0x1a   :  { %24 = dma.hbm_to_vmem [thread:$0]  %s1585_s0, 128, %s19_s23, [#allocation3], %s1513_s25, %s1513_s25, %s1514_s26  }
  0x1b   :  { %s1515_s29 = smov [#allocation7]   ;;  %s1516_s5 = smov [#allocation8]  }
  0x1c   :  { %s42_s30 = sshll.u32 %s1515_s29, 4  ;;  %s54_s1 = sshll.u32 %s1516_s5, 4  ;;  %s43_s30 = int_to_ptr.vmem [resolvable:$true] %s42_s30  ;;  %s55_s1 = int_to_ptr.vmem [resolvable:$true] %s54_s1 }
  0x1d   :  { %s1449_s6 = scalar_lea.vmem %s43_s30, 4096  ;;  %p1454_p11 = scmp.lt.s32.totalorder %s43_s30, %s43_s30 }
  0x1e   :  { %p1450_p10 = scmp.ne.s32.totalorder %s43_s30, %s1449_s6  ;;  %p1455_p12 = scmp.lt.s32.totalorder %s1449_s6, %s1449_s6 }
  0x20   :  { %p1456_p13 = por %p1455_p12, %p1454_p11 }
  0x22   :  { %p1457_p0 = pnand %p1456_p13, %p1450_p10 }
  0x24   :  { %1460 = shalt.err (!%p1457_p0)
}
  0x25   :  { %48 = dma.hbm_to_vmem [thread:$0]  %s1587_s2, 4096, %s43_s30, [#allocation6], %s1510_s18, %s1510_s18, %s1511_s19  }
  0x26   :  { %s1469_s0 = scalar_lea.vmem %s55_s1, 4096  ;;  %p1474_p2 = scmp.lt.s32.totalorder %s55_s1, %s55_s1 }
  0x27   :  { %p1470_p1 = scmp.ne.s32.totalorder %s55_s1, %s1469_s0  ;;  %p1475_p3 = scmp.lt.s32.totalorder %s1469_s0, %s1469_s0 }
  0x29   :  { %p1476_p4 = por %p1475_p3, %p1474_p2 }
  0x2b   :  { %p1477_p5 = pnand %p1476_p4, %p1470_p1 }
  0x2d   :  { %1480 = shalt.err (!%p1477_p5)
}
  0x2e   :  { %60 = dma.hbm_to_vmem [thread:$0]  %s1588_s3, 4096, %s55_s1, [#allocation9], %s1513_s25, %s1513_s25, %s1514_s26  }
  0x2f   :  { %1501 = dma.done.wait [#allocation3], 128  }
  0x30   :  { %1502 = vsyncadd [#allocation3], 4294967168 }
  0x31   :  { %1503 = dma.done.wait [#allocation6], 8192  }
  0x32   :  { %1504 = vsyncadd [#allocation6], 4294959104 }
  0x33   :  { %1505 = dma.done.wait [#allocation9], 4096  }
  0x34   :  { %1506 = vsyncadd [#allocation9], 4294963200  ;;  %v1517_v0 = vmov 0   ;;  %v1240_v1 = vld [vmem:[#allocation5 + $0xe4] ss:$16 sps:$4 sm:$0xff]   ;;  %v1566_v35 = vld [vmem:[#allocation2] sm:$0xff]  }
  0x35   :  { %306 = vmatprep.mubr.bf16.mxu0 %v1517_v0  ;;  %349 = vmatprep.mubr.bf16.mxu1 %v1517_v0  ;;  %v1242_v2 = vld [vmem:[#allocation5 + $0xec] ss:$16 sps:$4 sm:$0xff]   ;;  %v1244_v3 = vld [vmem:[#allocation5 + $0xe0] ss:$16 sps:$4 sm:$0xff]   ;;  %v1245_v4 = vld [vmem:[#allocation5 + $0xe8] ss:$16 sps:$4 sm:$0xff]  }
  0x36   :  { %274 = vmatprep.subr.bf16.mxu0 %v1240_v1  ;;  %317 = vmatprep.subr.bf16.mxu1 %v1242_v2  ;;  %v1246_v5 = vld [vmem:[#allocation5 + $0xc4] ss:$16 sps:$4 sm:$0xff]   ;;  %v1248_v6 = vld [vmem:[#allocation5 + $0xcc] ss:$16 sps:$4 sm:$0xff]   ;;  %v1250_v7 = vld [vmem:[#allocation5 + $0xc0] ss:$16 sps:$4 sm:$0xff]  }
  0x37   :  { %275 = vmatpush1.bf16.msra.mxu0 %v1244_v3  ;;  %318 = vmatpush1.bf16.msra.mxu1 %v1245_v4  ;;  %v1251_v8 = vld [vmem:[#allocation5 + $0xc8] ss:$16 sps:$4 sm:$0xff]   ;;  %v1252_v9 = vld [vmem:[#allocation5 + $0xa4] ss:$16 sps:$4 sm:$0xff]   ;;  %v1254_v10 = vld [vmem:[#allocation5 + $0xac] ss:$16 sps:$4 sm:$0xff]  }
  0x38   :  { %276 = vmatprep.subr.bf16.mxu0 %v1246_v5  ;;  %319 = vmatprep.subr.bf16.mxu1 %v1248_v6  ;;  %v1256_v11 = vld [vmem:[#allocation5 + $0xa0] ss:$16 sps:$4 sm:$0xff]   ;;  %v1257_v12 = vld [vmem:[#allocation5 + $0xa8] ss:$16 sps:$4 sm:$0xff]   ;;  %v1258_v13 = vld [vmem:[#allocation5 + $0x84] ss:$16 sps:$4 sm:$0xff]  }
  0x39   :  { %v1260_v14 = vld [vmem:[#allocation5 + $0x8c] ss:$16 sps:$4 sm:$0xff]   ;;  %v1262_v15 = vld [vmem:[#allocation5 + $0x80] ss:$16 sps:$4 sm:$0xff]   ;;  %v1263_v16 = vld [vmem:[#allocation5 + $0x88] ss:$16 sps:$4 sm:$0xff]  }
  0x3a   :  { %v1264_v17 = vld [vmem:[#allocation5 + $0x64] ss:$16 sps:$4 sm:$0xff]   ;;  %v1266_v18 = vld [vmem:[#allocation5 + $0x6c] ss:$16 sps:$4 sm:$0xff]   ;;  %v1268_v19 = vld [vmem:[#allocation5 + $0x60] ss:$16 sps:$4 sm:$0xff]  }
  0x3b   :  { %277 = vmatpush1.bf16.msra.mxu0 %v1250_v7  ;;  %320 = vmatpush1.bf16.msra.mxu1 %v1251_v8  ;;  %v1269_v20 = vld [vmem:[#allocation5 + $0x68] ss:$16 sps:$4 sm:$0xff]   ;;  %v1270_v21 = vld [vmem:[#allocation5 + $0x44] ss:$16 sps:$4 sm:$0xff]   ;;  %v1272_v22 = vld [vmem:[#allocation5 + $0x4c] ss:$16 sps:$4 sm:$0xff]  }
  0x3c   :  { %278 = vmatprep.subr.bf16.mxu0 %v1252_v9  ;;  %321 = vmatprep.subr.bf16.mxu1 %v1254_v10  ;;  %v1274_v23 = vld [vmem:[#allocation5 + $0x40] ss:$16 sps:$4 sm:$0xff]   ;;  %v1275_v24 = vld [vmem:[#allocation5 + $0x48] ss:$16 sps:$4 sm:$0xff]   ;;  %v1276_v25 = vld [vmem:[#allocation5 + $0x24] ss:$16 sps:$4 sm:$0xff]  }
  0x3d   :  { %v1278_v26 = vld [vmem:[#allocation5 + $0x2c] ss:$16 sps:$4 sm:$0xff]   ;;  %v1280_v27 = vld [vmem:[#allocation5 + $0x20] ss:$16 sps:$4 sm:$0xff]   ;;  %v1281_v28 = vld [vmem:[#allocation5 + $0x28] ss:$16 sps:$4 sm:$0xff]  }
  0x3e   :  { %v1282_v29 = vld [vmem:[#allocation5 + $0x4] ss:$16 sps:$4 sm:$0xff]   ;;  %v1284_v30 = vld [vmem:[#allocation5 + $0xc] ss:$16 sps:$4 sm:$0xff]   ;;  %v1286_v31 = vld [vmem:[#allocation5] ss:$16 sps:$4 sm:$0xff]  }
  0x3f   :  { %279 = vmatpush1.bf16.msra.mxu0 %v1256_v11  ;;  %322 = vmatpush1.bf16.msra.mxu1 %v1257_v12  ;;  %v1287_v32 = vld [vmem:[#allocation5 + $0x8] ss:$16 sps:$4 sm:$0xff]   ;;  %v1291_v33 = vld [vmem:[#allocation7 + $0xe4] ss:$16 sps:$4 sm:$0xff]   ;;  %v1294_v34 = vld [vmem:[#allocation7 + $0xec] ss:$16 sps:$4 sm:$0xff]  }
  0x40   :  { %280 = vmatprep.subr.bf16.mxu0 %v1258_v13  ;;  %323 = vmatprep.subr.bf16.mxu1 %v1260_v14  ;;  %v1289_v36 = vld [vmem:[#allocation7 + $0xe0] ss:$16 sps:$4 sm:$0xff]   ;;  %v1292_v37 = vld [vmem:[#allocation7 + $0xe8] ss:$16 sps:$4 sm:$0xff]   ;;  %v1297_v38 = vld [vmem:[#allocation7 + $0xc4] ss:$16 sps:$4 sm:$0xff]  }
  0x41   :  { %v1300_v39 = vld [vmem:[#allocation7 + $0xcc] ss:$16 sps:$4 sm:$0xff]   ;;  %v1295_v40 = vld [vmem:[#allocation7 + $0xc0] ss:$16 sps:$4 sm:$0xff]   ;;  %v1298_v41 = vld [vmem:[#allocation7 + $0xc8] ss:$16 sps:$4 sm:$0xff]  }
  0x42   :  { %v1303_v42 = vld [vmem:[#allocation7 + $0xa4] ss:$16 sps:$4 sm:$0xff]   ;;  %v1306_v43 = vld [vmem:[#allocation7 + $0xac] ss:$16 sps:$4 sm:$0xff]   ;;  %v1301_v44 = vld [vmem:[#allocation7 + $0xa0] ss:$16 sps:$4 sm:$0xff]  }
  0x43   :  { %281 = vmatpush1.bf16.msra.mxu0 %v1262_v15  ;;  %324 = vmatpush1.bf16.msra.mxu1 %v1263_v16  ;;  %v1304_v45 = vld [vmem:[#allocation7 + $0xa8] ss:$16 sps:$4 sm:$0xff]   ;;  %v1309_v46 = vld [vmem:[#allocation7 + $0x84] ss:$16 sps:$4 sm:$0xff]   ;;  %v1312_v47 = vld [vmem:[#allocation7 + $0x8c] ss:$16 sps:$4 sm:$0xff]  }
  0x44   :  { %282 = vmatprep.subr.bf16.mxu0 %v1264_v17  ;;  %325 = vmatprep.subr.bf16.mxu1 %v1266_v18  ;;  %v1307_v48 = vld [vmem:[#allocation7 + $0x80] ss:$16 sps:$4 sm:$0xff]   ;;  %v1310_v49 = vld [vmem:[#allocation7 + $0x88] ss:$16 sps:$4 sm:$0xff]   ;;  %v1315_v50 = vld [vmem:[#allocation7 + $0x64] ss:$16 sps:$4 sm:$0xff]  }
  0x45   :  { %v1318_v51 = vld [vmem:[#allocation7 + $0x6c] ss:$16 sps:$4 sm:$0xff]   ;;  %v1313_v52 = vld [vmem:[#allocation7 + $0x60] ss:$16 sps:$4 sm:$0xff]   ;;  %v1316_v53 = vld [vmem:[#allocation7 + $0x68] ss:$16 sps:$4 sm:$0xff]  }
  0x46   :  { %v1321_v54 = vld [vmem:[#allocation7 + $0x44] ss:$16 sps:$4 sm:$0xff]   ;;  %v1324_v55 = vld [vmem:[#allocation7 + $0x4c] ss:$16 sps:$4 sm:$0xff]   ;;  %v1319_v56 = vld [vmem:[#allocation7 + $0x40] ss:$16 sps:$4 sm:$0xff]  }
  0x47   :  { %283 = vmatpush1.bf16.msra.mxu0 %v1268_v19  ;;  %326 = vmatpush1.bf16.msra.mxu1 %v1269_v20  ;;  %v1322_v57 = vld [vmem:[#allocation7 + $0x48] ss:$16 sps:$4 sm:$0xff]   ;;  %v1327_v58 = vld [vmem:[#allocation7 + $0x24] ss:$16 sps:$4 sm:$0xff]   ;;  %v1330_v59 = vld [vmem:[#allocation7 + $0x2c] ss:$16 sps:$4 sm:$0xff]  }
  0x48   :  { %284 = vmatprep.subr.bf16.mxu0 %v1270_v21  ;;  %327 = vmatprep.subr.bf16.mxu1 %v1272_v22  ;;  %v1325_v60 = vld [vmem:[#allocation7 + $0x20] ss:$16 sps:$4 sm:$0xff]   ;;  %v1328_v61 = vld [vmem:[#allocation7 + $0x28] ss:$16 sps:$4 sm:$0xff]   ;;  %v1333_v62 = vld [vmem:[#allocation7 + $0x4] ss:$16 sps:$4 sm:$0xff]  }
  0x49   :  { %v1336_v63 = vld [vmem:[#allocation7 + $0xc] ss:$16 sps:$4 sm:$0xff]   ;;  %v1334_v1 = vld [vmem:[#allocation7 + $0x8] ss:$16 sps:$4 sm:$0xff]   ;;  %v1341_v6 = vld [vmem:[#allocation8 + $0x70] sm:$0xff]   ;;  %s1518_s2 = smov [#allocation10]  }
  0x4a   :  { %v1337_v2 = vld [vmem:[#allocation8 + $0x78] sm:$0xff]   ;;  %v1342_v7 = vld [vmem:[#allocation8 + $0xf0] sm:$0xff]   ;;  %v1345_v10 = vld [vmem:[#allocation8 + $0x68] sm:$0xff]   ;;  %s1065_s3 = sshll.u32 %s1518_s2, 4  ;;  %s1066_s3 = int_to_ptr.vmem [resolvable:$true] %s1065_s3 }
  0x4b   :  { %285 = vmatpush1.bf16.msra.mxu0 %v1274_v23  ;;  %328 = vmatpush1.bf16.msra.mxu1 %v1275_v24  ;;  %v1338_v3 = vld [vmem:[#allocation8 + $0xf8] sm:$0xff]   ;;  %v1343_v8 = vld [vmem:[#allocation8 + $0x30] sm:$0xff]   ;;  %v1346_v11 = vld [vmem:[#allocation8 + $0xe8] sm:$0xff]   ;;  %s1481_s11 = scalar_lea.vmem %s1066_s3, 256  ;;  %p1486_p7 = scmp.lt.s32.totalorder %s1066_s3, %s1066_s3 }
  0x4c   :  { %286 = vmatprep.subr.bf16.mxu0 %v1276_v25  ;;  %329 = vmatprep.subr.bf16.mxu1 %v1278_v26  ;;  %v1339_v4 = vld [vmem:[#allocation8 + $0x38] sm:$0xff]   ;;  %v1344_v9 = vld [vmem:[#allocation8 + $0xb0] sm:$0xff]   ;;  %v1347_v12 = vld [vmem:[#allocation8 + $0x28] sm:$0xff]   ;;  %p1482_p6 = scmp.ne.s32.totalorder %s1066_s3, %s1481_s11  ;;  %p1487_p8 = scmp.lt.s32.totalorder %s1481_s11, %s1481_s11 }
  0x4d   :  { %v1340_v5 = vld [vmem:[#allocation8 + $0xb8] sm:$0xff]   ;;  %v1348_v13 = vld [vmem:[#allocation8 + $0xa8] sm:$0xff]   ;;  %v1349_v14 = vld [vmem:[#allocation8 + $0x60] sm:$0xff]  }
  0x4e   :  { %v1350_v15 = vld [vmem:[#allocation8 + $0xe0] sm:$0xff]   ;;  %v1353_v18 = vld [vmem:[#allocation8 + $0x58] sm:$0xff]   ;;  %v1357_v22 = vld [vmem:[#allocation8 + $0x50] sm:$0xff]   ;;  %p1488_p9 = por %p1487_p8, %p1486_p7 }
  0x4f   :  { %287 = vmatpush1.bf16.msra.mxu0 %v1280_v27  ;;  %330 = vmatpush1.bf16.msra.mxu1 %v1281_v28  ;;  %v1351_v16 = vld [vmem:[#allocation8 + $0x20] sm:$0xff]   ;;  %v1354_v19 = vld [vmem:[#allocation8 + $0xd8] sm:$0xff]   ;;  %v1358_v23 = vld [vmem:[#allocation8 + $0xd0] sm:$0xff]  }
  0x50   :  { %288 = vmatprep.subr.bf16.mxu0 %v1282_v29  ;;  %331 = vmatprep.subr.bf16.mxu1 %v1284_v30  ;;  %v1352_v17 = vld [vmem:[#allocation8 + $0xa0] sm:$0xff]   ;;  %v1355_v20 = vld [vmem:[#allocation8 + $0x18] sm:$0xff]   ;;  %v1359_v24 = vld [vmem:[#allocation8 + $0x10] sm:$0xff]   ;;  %p1489_p10 = pnand %p1488_p9, %p1482_p6 }
  0x51   :  { %v1356_v21 = vld [vmem:[#allocation8 + $0x98] sm:$0xff]   ;;  %v1360_v25 = vld [vmem:[#allocation8 + $0x90] sm:$0xff]   ;;  %v1361_v26 = vld [vmem:[#allocation8 + $0x48] sm:$0xff]  }
  0x52   :  { %v1362_v27 = vld [vmem:[#allocation8 + $0xc8] sm:$0xff]   ;;  %v1365_v30 = vld [vmem:[#allocation8 + $0x40] sm:$0xff]  }
  0x53   :  { %289 = vmatpush1.bf16.msra.mxu0 %v1286_v31  ;;  %332 = vmatpush1.bf16.msra.mxu1 %v1287_v32  ;;  %v1363_v28 = vld [vmem:[#allocation8 + $0x8] sm:$0xff]   ;;  %v1366_v31 = vld [vmem:[#allocation8 + $0xc0] sm:$0xff]  }
  0x54   :  { %608 = vmatprep.subr.bf16.mxu0 %v1291_v33  ;;  %651 = vmatprep.subr.bf16.mxu1 %v1294_v34  ;;  %v1364_v29 = vld [vmem:[#allocation8 + $0x88] sm:$0xff]   ;;  %v1367_v32 = vld [vmem:[#allocation8] sm:$0xff]  }
  0x55   :  { %v1368_v33 = vld [vmem:[#allocation8 + $0x80] sm:$0xff]  }
  0x56   :  { %307 = vmatmul.mubr.bf16.vlgmr.msra.gmra.mxu0 %v1566_v35  ;;  %350 = vmatmul.mubr.bf16.vlgmr.msra.gmra.mxu1 %v1566_v35 }
  0x57   :  { %609 = vmatpush1.bf16.msra.mxu0 %v1289_v36  ;;  %652 = vmatpush1.bf16.msra.mxu1 %v1292_v37 }
  0x58   :  { %610 = vmatprep.subr.bf16.mxu0 %v1297_v38  ;;  %653 = vmatprep.subr.bf16.mxu1 %v1300_v39 }
  0x59   :  { %640 = vmatprep.mubr.bf16.mxu0 %v1517_v0  ;;  %683 = vmatprep.mubr.bf16.mxu1 %v1517_v0  ;;  %v1331_v0 = vld [vmem:[#allocation7] ss:$16 sps:$4 sm:$0xff]  }
  0x5b   :  { %611 = vmatpush1.bf16.msra.mxu0 %v1295_v40  ;;  %654 = vmatpush1.bf16.msra.mxu1 %v1298_v41 }
  0x5c   :  { %612 = vmatprep.subr.bf16.mxu0 %v1303_v42  ;;  %655 = vmatprep.subr.bf16.mxu1 %v1306_v43 }
  0x5f   :  { %613 = vmatpush1.bf16.msra.mxu0 %v1301_v44  ;;  %656 = vmatpush1.bf16.msra.mxu1 %v1304_v45 }
  0x60   :  { %614 = vmatprep.subr.bf16.mxu0 %v1309_v46  ;;  %657 = vmatprep.subr.bf16.mxu1 %v1312_v47 }
  0x63   :  { %615 = vmatpush1.bf16.msra.mxu0 %v1307_v48  ;;  %658 = vmatpush1.bf16.msra.mxu1 %v1310_v49 }
  0x64   :  { %616 = vmatprep.subr.bf16.mxu0 %v1315_v50  ;;  %659 = vmatprep.subr.bf16.mxu1 %v1318_v51 }
  0x67   :  { %617 = vmatpush1.bf16.msra.mxu0 %v1313_v52  ;;  %660 = vmatpush1.bf16.msra.mxu1 %v1316_v53 }
  0x68   :  { %618 = vmatprep.subr.bf16.mxu0 %v1321_v54  ;;  %661 = vmatprep.subr.bf16.mxu1 %v1324_v55 }
  0x6b   :  { %619 = vmatpush1.bf16.msra.mxu0 %v1319_v56  ;;  %662 = vmatpush1.bf16.msra.mxu1 %v1322_v57 }
  0x6c   :  { %620 = vmatprep.subr.bf16.mxu0 %v1327_v58  ;;  %663 = vmatprep.subr.bf16.mxu1 %v1330_v59 }
  0x6f   :  { %621 = vmatpush1.bf16.msra.mxu0 %v1325_v60  ;;  %664 = vmatpush1.bf16.msra.mxu1 %v1328_v61 }
  0x70   :  { %622 = vmatprep.subr.bf16.mxu0 %v1333_v62  ;;  %665 = vmatprep.subr.bf16.mxu1 %v1336_v63 }
  0x73   :  { %623 = vmatpush1.bf16.msra.mxu0 %v1331_v0  ;;  %666 = vmatpush1.bf16.msra.mxu1 %v1334_v1 }
  0x74   :  { %1184 = vmatprep.subr.bf16.mxu0 %v1337_v2  ;;  %1206 = vmatprep.subr.bf16.mxu1 %v1338_v3 }
  0x76   :  { %641 = vmatmul.mubr.bf16.vlgmr.msra.gmra.mxu0 %v1566_v35  ;;  %684 = vmatmul.mubr.bf16.vlgmr.msra.gmra.mxu1 %v1566_v35 }
  0x77   :  { %1185 = vmatpush3.bf16.msra.mxu0 %v1339_v4  ;;  %1207 = vmatpush3.bf16.msra.mxu1 %v1340_v5 }
  0x78   :  { %1186 = vmatprep.subr.bf16.mxu0 %v1341_v6  ;;  %1208 = vmatprep.subr.bf16.mxu1 %v1342_v7 }
  0x7b   :  { %1187 = vmatpush3.bf16.msra.mxu0 %v1343_v8  ;;  %1209 = vmatpush3.bf16.msra.mxu1 %v1344_v9 }
  0x7c   :  { %1188 = vmatprep.subr.bf16.mxu0 %v1345_v10  ;;  %1210 = vmatprep.subr.bf16.mxu1 %v1346_v11 }
  0x7f   :  { %1189 = vmatpush3.bf16.msra.mxu0 %v1347_v12  ;;  %1211 = vmatpush3.bf16.msra.mxu1 %v1348_v13 }
  0x80   :  { %1190 = vmatprep.subr.bf16.mxu0 %v1349_v14  ;;  %1212 = vmatprep.subr.bf16.mxu1 %v1350_v15 }
  0x83   :  { %1191 = vmatpush3.bf16.msra.mxu0 %v1351_v16  ;;  %1213 = vmatpush3.bf16.msra.mxu1 %v1352_v17 }
  0x84   :  { %1192 = vmatprep.subr.bf16.mxu0 %v1353_v18  ;;  %1214 = vmatprep.subr.bf16.mxu1 %v1354_v19 }
  0x87   :  { %1193 = vmatpush3.bf16.msra.mxu0 %v1355_v20  ;;  %1215 = vmatpush3.bf16.msra.mxu1 %v1356_v21 }
  0x88   :  { %1194 = vmatprep.subr.bf16.mxu0 %v1357_v22  ;;  %1216 = vmatprep.subr.bf16.mxu1 %v1358_v23 }
  0x8b   :  { %1195 = vmatpush3.bf16.msra.mxu0 %v1359_v24  ;;  %1217 = vmatpush3.bf16.msra.mxu1 %v1360_v25 }
  0x8c   :  { %1196 = vmatprep.subr.bf16.mxu0 %v1361_v26  ;;  %1218 = vmatprep.subr.bf16.mxu1 %v1362_v27 }
  0x8f   :  { %1197 = vmatpush3.bf16.msra.mxu0 %v1363_v28  ;;  %1219 = vmatpush3.bf16.msra.mxu1 %v1364_v29 }
  0x90   :  { %1198 = vmatprep.subr.bf16.mxu0 %v1365_v30  ;;  %1220 = vmatprep.subr.bf16.mxu1 %v1366_v31 }
  0x93   :  { %1199 = vmatpush3.bf16.msra.mxu0 %v1367_v32  ;;  %1221 = vmatpush3.bf16.msra.mxu1 %v1368_v33 }
 0x116   :  { %v1574_v34 = vpop.f32.mrf.mxu0  ;;  %v1576_v35 = vpop.f32.mrf.mxu1 }
 0x117   :  { %v1112_v36 = vmul.f32 -1.442695, %v1574_v34  ;;  %v1114_v37 = vmul.f32 -1.442695, %v1576_v35 }
 0x118   :  { %v310_v38 = vpop.f32.mrf.mxu0  ;;  %v353_v39 = vpop.f32.mrf.mxu1 }
 0x119   :  { %1369 = vpow2.f32 %v1112_v36  ;;  %v1113_v40 = vmul.f32 -1.442695, %v310_v38  ;;  %v1115_v41 = vmul.f32 -1.442695, %v353_v39 }
 0x11a   :  { %1371 = vpow2.f32 %v1114_v37  ;;  %v312_v42 = vpop.f32.mrf.mxu0  ;;  %v355_v43 = vpop.f32.mrf.mxu1 }
 0x11b   :  { %1373 = vpow2.f32 %v1113_v40  ;;  %v1116_v44 = vmul.f32 -1.442695, %v312_v42  ;;  %v1118_v45 = vmul.f32 -1.442695, %v355_v43 }
 0x11c   :  { %1375 = vpow2.f32 %v1115_v41  ;;  %v314_v46 = vpop.f32.mrf.mxu0  ;;  %v357_v47 = vpop.f32.mrf.mxu1 }
 0x11d   :  { %1377 = vpow2.f32 %v1116_v44  ;;  %v1117_v48 = vmul.f32 -1.442695, %v314_v46  ;;  %v1119_v49 = vmul.f32 -1.442695, %v357_v47 }
 0x11e   :  { %1379 = vpow2.f32 %v1118_v45 }
 0x11f   :  { %1381 = vpow2.f32 %v1117_v48 }
 0x120   :  { %1383 = vpow2.f32 %v1119_v49 }
 0x126   :  { %v1370_v50 = vpop.eup %1369 }
 0x127   :  { %v1372_v51 = vpop.eup %1371  ;;  %v384_v52 = vadd.f32 1.0, %v1370_v50 }
 0x128   :  { %v1374_v53 = vpop.eup %1373  ;;  %v386_v54 = vadd.f32 1.0, %v1372_v51 }
 0x129   :  { %v1376_v55 = vpop.eup %1375  ;;  %1385 = vrcp.f32 %v384_v52  ;;  %v385_v56 = vadd.f32 1.0, %v1374_v53 }
 0x12a   :  { %v1378_v57 = vpop.eup %1377  ;;  %1387 = vrcp.f32 %v386_v54  ;;  %v387_v58 = vadd.f32 1.0, %v1376_v55 }
 0x12b   :  { %v1380_v59 = vpop.eup %1379  ;;  %1389 = vrcp.f32 %v385_v56  ;;  %v388_v60 = vadd.f32 1.0, %v1378_v57 }
 0x12c   :  { %v1382_v61 = vpop.eup %1381  ;;  %1391 = vrcp.f32 %v387_v58  ;;  %v390_v62 = vadd.f32 1.0, %v1380_v59 }
 0x12d   :  { %v1384_v63 = vpop.eup %1383  ;;  %1393 = vrcp.f32 %v388_v60  ;;  %v389_v0 = vadd.f32 1.0, %v1382_v61 }
 0x12e   :  { %1395 = vrcp.f32 %v390_v62  ;;  %v391_v1 = vadd.f32 1.0, %v1384_v63 }
 0x12f   :  { %1397 = vrcp.f32 %v389_v0 }
 0x130   :  { %1399 = vrcp.f32 %v391_v1 }
 0x136   :  { %v1386_v2 = vpop.eup %1385  ;;  %v642_v3 = vpop.f32.mrf.mxu0 }
 0x137   :  { %v685_v4 = vpop.f32.mrf.mxu1  ;;  %v1388_v5 = vpop.eup %1387  ;;  %v408_v17 = vmul.f32 %v1386_v2, %v1574_v34 }
 0x138   :  { %v1390_v6 = vpop.eup %1389  ;;  %v644_v7 = vpop.f32.mrf.mxu0  ;;  %v410_v21 = vmul.f32 %v1388_v5, %v1576_v35 }
 0x139   :  { %v687_v8 = vpop.f32.mrf.mxu1  ;;  %v1392_v9 = vpop.eup %1391  ;;  %v409_v13 = vmul.f32 %v1390_v6, %v310_v38  ;;  %v694_v30 = vmul.f32 %v642_v3, %v408_v17 }
 0x13a   :  { %v1394_v10 = vpop.eup %1393  ;;  %v646_v11 = vpop.f32.mrf.mxu0  ;;  %v411_v18 = vmul.f32 %v1392_v9, %v353_v39  ;;  %v696_v33 = vmul.f32 %v685_v4, %v410_v21 }
 0x13b   :  { %v1396_v12 = vpop.eup %1395  ;;  %v412_v14 = vmul.f32 %v1394_v10, %v312_v42  ;;  %v689_v15 = vpop.f32.mrf.mxu1  ;;  %v695_v26 = vmul.f32 %v644_v7, %v409_v13 }
 0x13c   :  { %v1398_v16 = vpop.eup %1397  ;;  %v414_v19 = vmul.f32 %v1396_v12, %v355_v43  ;;  %v648_v25 = vpop.f32.mrf.mxu0  ;;  %v697_v31 = vmul.f32 %v687_v8, %v411_v18 }
 0x13d   :  { %v1400_v20 = vpop.eup %1399  ;;  %v413_v22 = vmul.f32 %v1398_v16, %v314_v46  ;;  %v698_v24 = vmul.f32 %v646_v11, %v412_v14  ;;  %v691_v29 = vpop.f32.mrf.mxu1 }
 0x13e   :  { %v415_v23 = vmul.f32 %v1400_v20, %v357_v47  ;;  %v700_v27 = vmul.f32 %v689_v15, %v414_v19 }
 0x13f   :  { %v699_v28 = vmul.f32 %v648_v25, %v413_v22  ;;  %v702_v37 = vpack.c.bf16 %v698_v24, %v694_v30 }
 0x140   :  { %v701_v32 = vmul.f32 %v691_v29, %v415_v23  ;;  %v704_v38 = vpack.c.bf16 %v700_v27, %v696_v33 }
 0x141   :  { %v703_v36 = vpack.c.bf16 %v699_v28, %v695_v26 }
 0x142   :  { %v705_v34 = vpack.c.bf16 %v701_v32, %v697_v31 }
 0x143   :  { %994 = vmatprep.mubr.bf16.mxu0 %v703_v36 }
 0x144   :  { %1035 = vmatprep.mubr.bf16.mxu1 %v705_v34  ;;  %995 = vmatmul.mubr.bf16.vlgmr.msra.gmra.mxu0 %v702_v37 }
 0x145   :  { %1036 = vmatmul.mubr.bf16.vlgmr.msra.gmra.mxu1 %v704_v38 }
 0x204   :  { %v1200_v35 = vpop.f32.mrf.mxu0 }
 0x205   :  { %v1222_v39 = vpop.f32.mrf.mxu1 }
 0x206   :  { %v1201_v40 = vpop.f32.mrf.mxu0 }
 0x207   :  { %v1202_v41 = vadd.f32 %v1201_v40, %v1200_v35  ;;  %v1223_v42 = vpop.f32.mrf.mxu1 }
 0x208   :  { %v1224_v43 = vadd.f32 %v1223_v42, %v1222_v39  ;;  %v1203_v44 = vpop.f32.mrf.mxu0 }
 0x209   :  { %v1225_v45 = vpop.f32.mrf.mxu1 }
 0x20a   :  { %v1038_v46 = vadd.f32 %v1224_v43, %v1202_v41  ;;  %v1204_v47 = vpop.f32.mrf.mxu0 }
 0x20b   :  { %v1205_v48 = vadd.f32 %v1204_v47, %v1203_v44  ;;  %v1226_v49 = vpop.f32.mrf.mxu1 }
 0x20c   :  { %1048 = vst [vmem:[#allocation10] sm:$0xff] %v1038_v46  ;;  %v1227_v50 = vadd.f32 %v1226_v49, %v1225_v45 }
 0x20e   :  { %v1041_v51 = vadd.f32 %v1227_v50, %v1205_v48 }
 0x210   :  { %1049 = vst [vmem:[#allocation10 + $0x8] sm:$0xff] %v1041_v51 }
 0x211   :  { %1492 = shalt.err (!%p1489_p10)
}
 0x212   :  { %s1519_s12 = smov 128   ;;  %s1520_s13 = smov 8  }
 0x213   :  { %1071 = dma.vmem_to_hbm [thread:$0]  %s1066_s3, 256, %s1589_s4, [#allocation4], %s1519_s12, %s1519_s12, %s1520_s13  }
 0x214   :  { %1507 = dma.done.wait [#allocation4], 256  }
 0x215   :  { %1508 = vsyncadd [#allocation4], 4294967040 }
 0x216   :  { %1075 = vsyncpa [#allocation3], 1 }
 0x217   :  { %1076 = vsyncpa [#allocation6], 1 }
 0x218   :  { %1077 = vsyncpa [#allocation9], 1 }
 0x219   :  { %1078 = vsyncpa [#allocation4], 1 }

</bundles_post_ra>
